<compile_context>
chip_gen: v5e
topology: v5e:2x2
jax: 0.10.0
libtpu: 0.0.40
codegen_flags: <defaults>
</compile_context>

<pallas_src>
import functools
import math

import jax
import jax.numpy as jnp
from jax.experimental import pallas as pl
from jax.experimental.pallas import tpu as pltpu


def _ceil_div(a, b):
    return -(-a // b)


def _ceil_to(a, b):
    return _ceil_div(a, b) * b


def _conv_bn_relu_kernel(x_ref, w_ref, shift_ref, o_ref, patch_ref, *,
                         ksize_h, ksize_w, c_in, w_pad_cols, dilation, span,
                         apply_relu):
    """One grid step = one (batch, output-row-tile).

    x_ref:     (1, 1, C_in, slab_win)   flattened (rows * W_pad) input slab incl. halo
    w_ref:     (C_out, KH*KW*C_in)      conv weight, BN scale folded in
    shift_ref: (C_out, 1)               folded BN shift (f32)
    o_ref:     (1, C_out, span)         span = tile_h * W_pad (lane-dense)
    patch_ref: (KH*KW*C_in, span)       patch matrix scratch, written once per tile
    """
    slab = x_ref[0, 0, :, :]                                    # (C_in, slab_win)
    # Build the patch matrix once: each tap is a lane-shifted copy of the dense slab.
    for kh in range(ksize_h):
        for kw in range(ksize_w):
            off = (kh * w_pad_cols + kw) * dilation
            tap = kh * ksize_w + kw
            patch_ref[tap * c_in:(tap + 1) * c_in, :] = slab[:, off:off + span]
    # Single MXU matmul: (C_out, K) x (K, span) -> (C_out, span), f32 accumulation.
    y = jnp.dot(w_ref[...], patch_ref[...], preferred_element_type=jnp.float32)
    y = y + shift_ref[...]                                      # folded BN shift
    if apply_relu:
        y = jnp.maximum(y, 0.0)
    o_ref[0] = y.astype(o_ref.dtype)


def conv_bn_relu(x, w, gamma=None, beta=None, run_mean=None, run_var=None, bias=None, *,
                 stride=1, pad=1, dilation=1, groups=1, bn_eps=1e-5,
                 has_relu=True, use_bf16_matmul=True):
    """x: (N, C_in, H, W) NCHW float32.  w: (C_out, C_in, KH, KW) (PyTorch OIHW).
    Returns (N, C_out, H_out, W_out) NCHW float32 = ReLU(BN_eval(Conv2d(x)))."""
    if groups != 1:
        # TODO(synk): grouped convolution (groups > 1) is not implemented in the Pallas path.
        raise NotImplementedError("groups != 1 not supported")

    N, C_in, H, W = x.shape
    C_out, _, KH, KW = w.shape
    compute_dtype = jnp.bfloat16 if use_bf16_matmul else jnp.float32
    itm = jnp.dtype(compute_dtype).itemsize

    # The kernel produces the dense stride-1 convolution over the padded image; strided
    # outputs are exact subsamples taken in the wrapper.
    # TODO(synk): stride > 1 therefore performs up to stride^2 redundant MACs.
    W_pad = W + 2 * pad
    H_full = H + 2 * pad - dilation * (KH - 1)      # stride-1 output rows
    W_full = W + 2 * pad - dilation * (KW - 1)      # stride-1 output cols

    # Keep C_in a multiple of the 32-bit sublane packing so patch stores stay word-aligned.
    pack = 4 // itm                                  # 1 (f32) / 2 (bf16)
    c_in_eff = _ceil_to(C_in, pack)
    K_taps = KH * KW * c_in_eff

    # ---- fold BN (eval mode) + optional conv bias into per-C_out scale / shift --------
    if gamma is not None:
        inv_std = 1.0 / jnp.sqrt(run_var.astype(jnp.float32) + bn_eps)
        scale = gamma.astype(jnp.float32) * inv_std
        shift = beta.astype(jnp.float32) - run_mean.astype(jnp.float32) * scale
        if bias is not None:
            shift = shift + bias.astype(jnp.float32) * scale
    else:
        scale = jnp.ones((C_out,), jnp.float32)
        shift = (bias.astype(jnp.float32) if bias is not None
                 else jnp.zeros((C_out,), jnp.float32))

    # Weight packed as (C_out, KH*KW*C_in), tap-major / channel-minor, BN scale folded in.
    w_p = jnp.pad(w.astype(jnp.float32), ((0, 0), (0, c_in_eff - C_in), (0, 0), (0, 0)))
    w_packed = jnp.transpose(w_p, (0, 2, 3, 1)).reshape(C_out, K_taps)
    w_packed = (w_packed * scale[:, None]).astype(compute_dtype)
    shift_col = shift.reshape(C_out, 1)

    # ---- row-tile selection against a padding-aware VMEM estimate ---------------------
    sub_g = 8 * (4 // itm)                           # sublane tile: 8 (f32) / 16 (bf16)
    max_off = ((KH - 1) * W_pad + (KW - 1)) * dilation
    halo_rows = _ceil_div(max_off, W_pad) if max_off else 0
    # tile_h a multiple of `align` keeps the flat output-block lane dim a multiple of 128.
    align = 128 // math.gcd(W_pad, 128)

    def _vmem_bytes(th):
        lane = lambda n: _ceil_to(max(n, 1), 128)
        span_ = th * W_pad
        win_ = (th + halo_rows) * W_pad
        in_b = 2 * _ceil_to(c_in_eff, sub_g) * lane(win_) * itm     # dbl-buffered input
        w_b = 2 * _ceil_to(C_out, sub_g) * lane(K_taps) * itm       # (tiny) weight
        sh_b = 2 * _ceil_to(C_out, 8) * 128 * 4                     # shift
        pat_b = _ceil_to(K_taps, sub_g) * lane(span_) * itm         # patch scratch
        y_b = _ceil_to(C_out, 8) * lane(span_) * 4                  # f32 matmul result
        out_b = 2 * _ceil_to(C_out, 8) * lane(span_) * 4            # dbl-buffered output
        return in_b + w_b + sh_b + pat_b + y_b + out_b

    try:
        vmem_cap = int(pltpu.get_tpu_info().vmem_capacity_bytes)
    except Exception:                                 # conservative (v7x-safe) fallback
        vmem_cap = 64 * 1024 * 1024
    budget = int(vmem_cap * 0.55)                     # ~70 MiB on v5e/v6e, ~35 MiB on v7x

    fits = lambda th: _vmem_bytes(th) <= budget
    if fits(H_full) and (N >= 2 or H_full < 2 * align):
        tile_h = H_full                               # one lane-dense tile per image
    else:
        tile_h = max(align, (H_full // align) * align)
        while tile_h > align and not fits(tile_h):
            tile_h -= align
        if N == 1 and H_full >= 2 * align:
            # Keep at least 2 grid steps so both v7x TensorCores get work.
            tile_h = min(tile_h, max(align, _ceil_to(_ceil_div(H_full, 2), align)))
    n_tiles = _ceil_div(H_full, tile_h)
    span = tile_h * W_pad
    slab_win = (tile_h + halo_rows) * W_pad

    need = _vmem_bytes(tile_h)
    vmem_limit = int(min(vmem_cap * 3 // 4,
                         max(32 * 1024 * 1024, need + 16 * 1024 * 1024)))
    if vmem_limit < need + 2 * 1024 * 1024:
        vmem_limit = int(min(vmem_cap - 4 * 1024 * 1024, need + 8 * 1024 * 1024))

    # ---- cast once, zero-pad, flatten spatial; gather per-tile row windows ------------
    R = n_tiles * tile_h + halo_rows
    x_pad = jnp.pad(x.astype(compute_dtype),
                    ((0, 0), (0, c_in_eff - C_in), (pad, R - H - pad), (pad, pad)))
    x_flat = x_pad.reshape(N, c_in_eff, R * W_pad)
    if n_tiles == 1:
        x_tiles = x_flat.reshape(N, 1, c_in_eff, slab_win)   # no halo duplication at all
    else:
        # Only the halo rows per tile are duplicated; the gather fuses with the pad/cast
        # producer above (one pass over the input).
        x_tiles = jnp.stack(
            [x_flat[:, :, t * tile_h * W_pad: t * tile_h * W_pad + slab_win]
             for t in range(n_tiles)], axis=1)

    kernel = functools.partial(
        _conv_bn_relu_kernel,
        ksize_h=KH, ksize_w=KW, c_in=c_in_eff, w_pad_cols=W_pad, dilation=dilation,
        span=span, apply_relu=has_relu)

    out = pl.pallas_call(
        kernel,
        out_shape=jax.ShapeDtypeStruct((N, C_out, n_tiles * span), jnp.float32),
        grid_spec=pltpu.PrefetchScalarGridSpec(
            num_scalar_prefetch=0,
            grid=(N, n_tiles),
            in_specs=[
                pl.BlockSpec((1, 1, c_in_eff, slab_win), lambda n, t: (n, t, 0, 0)),
                pl.BlockSpec((C_out, K_taps), lambda n, t: (0, 0)),
                pl.BlockSpec((C_out, 1), lambda n, t: (0, 0)),
            ],
            out_specs=pl.BlockSpec((1, C_out, span), lambda n, t: (n, 0, t)),
            scratch_shapes=[pltpu.VMEM((K_taps, span), compute_dtype)],
        ),
        compiler_params=pltpu.CompilerParams(
            dimension_semantics=("parallel", "parallel"),
            vmem_limit_bytes=vmem_limit),
    )(x_tiles, w_packed, shift_col)

    out = out.reshape(N, C_out, n_tiles * tile_h, W_pad)
    return out[:, :, 0:H_full:stride, 0:W_full:stride]


def _reference(x, w, gamma, beta, run_mean, run_var, *, stride=1, pad=1, dilation=1,
               bn_eps=1e-5, has_relu=True):
    y = jax.lax.conv_general_dilated(
        x, w, window_strides=(stride, stride),
        padding=[(pad, pad), (pad, pad)],
        rhs_dilation=(dilation, dilation),
        dimension_numbers=("NCHW", "OIHW", "NCHW"))
    inv_std = 1.0 / jnp.sqrt(run_var + bn_eps)
    y = (y - run_mean[None, :, None, None]) * (gamma * inv_std)[None, :, None, None] \
        + beta[None, :, None, None]
    return jnp.maximum(y, 0.0) if has_relu else y


if __name__ == "__main__":
    master_key = jax.random.PRNGKey(0)

    def run_case(key, n, c_in, c_out, h, w_sp, ksize, stride, pad, dilation,
                 use_bf16, tol):
        kx, kw_, kg, kb, km, kv = jax.random.split(key, 6)
        x = jax.random.normal(kx, (n, c_in, h, w_sp), dtype=jnp.float32)
        w = jax.random.normal(kw_, (c_out, c_in, ksize, ksize), dtype=jnp.float32) * 0.1
        gamma = 1.0 + 0.1 * jax.random.normal(kg, (c_out,), dtype=jnp.float32)
        beta = 0.1 * jax.random.normal(kb, (c_out,), dtype=jnp.float32)
        run_mean = 0.1 * jax.random.normal(km, (c_out,), dtype=jnp.float32)
        run_var = jnp.abs(jax.random.normal(kv, (c_out,), dtype=jnp.float32)) + 0.5

        fn = jax.jit(functools.partial(conv_bn_relu, stride=stride, pad=pad,
                                       dilation=dilation, use_bf16_matmul=use_bf16))
        out = jax.block_until_ready(fn(x, w, gamma, beta, run_mean, run_var))
        ref = _reference(x, w, gamma, beta, run_mean, run_var,
                         stride=stride, pad=pad, dilation=dilation)
        assert out.shape == ref.shape, (out.shape, ref.shape)
        err = float(jnp.max(jnp.abs(out - ref)))
        assert jnp.allclose(out, ref, atol=tol, rtol=tol), err

    keys = jax.random.split(master_key, 3)
    # ConvBnRelu(in_planes=4, out_planes=8, ksize=3, stride=1, pad=1): f32 and bf16 paths.
    run_case(keys[0], 2, 4, 8, 16, 16, 3, 1, 1, 1, use_bf16=False, tol=5e-4)
    run_case(keys[0], 2, 4, 8, 16, 16, 3, 1, 1, 1, use_bf16=True, tol=5e-2)
    # Multi-row-tile path (N=1 forces >= 2 tiles): exercises halo rows + tail padding.
    run_case(keys[1], 1, 3, 16, 70, 70, 3, 1, 1, 1, use_bf16=False, tol=5e-4)
    # Strided + dilated variant: exercises tap offsets and the subsampling epilogue.
    run_case(keys[2], 2, 4, 8, 16, 16, 3, 2, 2, 2, use_bf16=False, tol=5e-4)

    print("KERNEL_OK")
</pallas_src>

<mosaic_0001>
module attributes {stable_mosaic.version = 11 : i64} {
  func.func @_conv_bn_relu_kernel(%arg0: i32, %arg1: i32, %arg2: memref<1x1x4x342xf32, #tpu.memory_space<vmem>>, %arg3: memref<8x36xf32, #tpu.memory_space<vmem>>, %arg4: memref<8x1xf32, #tpu.memory_space<vmem>>, %arg5: memref<1x8x288xf32, #tpu.memory_space<vmem>>, %arg6: memref<36x288xf32, #tpu.memory_space<vmem>>) attributes {dimension_semantics = [#tpu.dimension_semantics<parallel>, #tpu.dimension_semantics<parallel>], iteration_bounds = array<i64: 2, 1>, scalar_prefetch = 0 : i64, scratch_operands = 1 : i64, tpu.core_type = #tpu.core_type<tc>, window_params = [{transform_indices = @transform_0, window_bounds = array<i64: 1, 1, 4, 342>}, {pipeline_mode = #tpu.pipeline_mode<synchronous>, transform_indices = @transform_1, window_bounds = array<i64: 8, 36>}, {pipeline_mode = #tpu.pipeline_mode<synchronous>, transform_indices = @transform_2, window_bounds = array<i64: 8, 1>}, {transform_indices = @transform_3, window_bounds = array<i64: 1, 8, 288>}]} {
    %c0 = arith.constant 0 : index
    %c0_0 = arith.constant 0 : index
    %c0_1 = arith.constant 0 : index
    %c0_2 = arith.constant 0 : index
    %0 = vector.load %arg2[%c0, %c0_0, %c0_1, %c0_2] : memref<1x1x4x342xf32, #tpu.memory_space<vmem>>, vector<1x1x4x342xf32>
    %1 = vector.shape_cast %0 : vector<1x1x4x342xf32> to vector<4x342xf32>
    %2 = vector.extract_strided_slice %1 {offsets = [0, 0], sizes = [4, 288], strides = [1, 1]} : vector<4x342xf32> to vector<4x288xf32>
    %c0_3 = arith.constant 0 : index
    %c0_4 = arith.constant 0 : index
    %3 = vector.load %arg6[%c0_3, %c0_4] : memref<36x288xf32, #tpu.memory_space<vmem>>, vector<4x288xf32>
    tpu.vector_store %arg6[%c0_3, %c0_4], %2 {strides = array<i32>} : memref<36x288xf32, #tpu.memory_space<vmem>>, vector<4x288xf32>,
    %4 = vector.extract_strided_slice %1 {offsets = [0, 1], sizes = [4, 288], strides = [1, 1]} : vector<4x342xf32> to vector<4x288xf32>
    %c4 = arith.constant 4 : index
    %c0_5 = arith.constant 0 : index
    %5 = vector.load %arg6[%c4, %c0_5] : memref<36x288xf32, #tpu.memory_space<vmem>>, vector<4x288xf32>
    tpu.vector_store %arg6[%c4, %c0_5], %4 {strides = array<i32>} : memref<36x288xf32, #tpu.memory_space<vmem>>, vector<4x288xf32>,
    %6 = vector.extract_strided_slice %1 {offsets = [0, 2], sizes = [4, 288], strides = [1, 1]} : vector<4x342xf32> to vector<4x288xf32>
    %c8 = arith.constant 8 : index
    %c0_6 = arith.constant 0 : index
    %7 = vector.load %arg6[%c8, %c0_6] : memref<36x288xf32, #tpu.memory_space<vmem>>, vector<4x288xf32>
    tpu.vector_store %arg6[%c8, %c0_6], %6 {strides = array<i32>} : memref<36x288xf32, #tpu.memory_space<vmem>>, vector<4x288xf32>,
    %8 = vector.extract_strided_slice %1 {offsets = [0, 18], sizes = [4, 288], strides = [1, 1]} : vector<4x342xf32> to vector<4x288xf32>
    %c12 = arith.constant 12 : index
    %c0_7 = arith.constant 0 : index
    %9 = vector.load %arg6[%c12, %c0_7] : memref<36x288xf32, #tpu.memory_space<vmem>>, vector<4x288xf32>
    tpu.vector_store %arg6[%c12, %c0_7], %8 {strides = array<i32>} : memref<36x288xf32, #tpu.memory_space<vmem>>, vector<4x288xf32>,
    %10 = vector.extract_strided_slice %1 {offsets = [0, 19], sizes = [4, 288], strides = [1, 1]} : vector<4x342xf32> to vector<4x288xf32>
    %c16 = arith.constant 16 : index
    %c0_8 = arith.constant 0 : index
    %11 = vector.load %arg6[%c16, %c0_8] : memref<36x288xf32, #tpu.memory_space<vmem>>, vector<4x288xf32>
    tpu.vector_store %arg6[%c16, %c0_8], %10 {strides = array<i32>} : memref<36x288xf32, #tpu.memory_space<vmem>>, vector<4x288xf32>,
    %12 = vector.extract_strided_slice %1 {offsets = [0, 20], sizes = [4, 288], strides = [1, 1]} : vector<4x342xf32> to vector<4x288xf32>
    %c20 = arith.constant 20 : index
    %c0_9 = arith.constant 0 : index
    %13 = vector.load %arg6[%c20, %c0_9] : memref<36x288xf32, #tpu.memory_space<vmem>>, vector<4x288xf32>
    tpu.vector_store %arg6[%c20, %c0_9], %12 {strides = array<i32>} : memref<36x288xf32, #tpu.memory_space<vmem>>, vector<4x288xf32>,
    %14 = vector.extract_strided_slice %1 {offsets = [0, 36], sizes = [4, 288], strides = [1, 1]} : vector<4x342xf32> to vector<4x288xf32>
    %c24 = arith.constant 24 : index
    %c0_10 = arith.constant 0 : index
    %15 = vector.load %arg6[%c24, %c0_10] : memref<36x288xf32, #tpu.memory_space<vmem>>, vector<4x288xf32>
    tpu.vector_store %arg6[%c24, %c0_10], %14 {strides = array<i32>} : memref<36x288xf32, #tpu.memory_space<vmem>>, vector<4x288xf32>,
    %16 = vector.extract_strided_slice %1 {offsets = [0, 37], sizes = [4, 288], strides = [1, 1]} : vector<4x342xf32> to vector<4x288xf32>
    %c28 = arith.constant 28 : index
    %c0_11 = arith.constant 0 : index
    %17 = vector.load %arg6[%c28, %c0_11] : memref<36x288xf32, #tpu.memory_space<vmem>>, vector<4x288xf32>
    tpu.vector_store %arg6[%c28, %c0_11], %16 {strides = array<i32>} : memref<36x288xf32, #tpu.memory_space<vmem>>, vector<4x288xf32>,
    %18 = vector.extract_strided_slice %1 {offsets = [0, 38], sizes = [4, 288], strides = [1, 1]} : vector<4x342xf32> to vector<4x288xf32>
    %c32 = arith.constant 32 : index
    %c0_12 = arith.constant 0 : index
    %19 = vector.load %arg6[%c32, %c0_12] : memref<36x288xf32, #tpu.memory_space<vmem>>, vector<4x288xf32>
    tpu.vector_store %arg6[%c32, %c0_12], %18 {strides = array<i32>} : memref<36x288xf32, #tpu.memory_space<vmem>>, vector<4x288xf32>,
    %c0_13 = arith.constant 0 : index
    %c0_14 = arith.constant 0 : index
    %20 = vector.load %arg3[%c0_13, %c0_14] : memref<8x36xf32, #tpu.memory_space<vmem>>, vector<8x36xf32>
    %c0_15 = arith.constant 0 : index
    %c0_16 = arith.constant 0 : index
    %21 = vector.load %arg6[%c0_15, %c0_16] : memref<36x288xf32, #tpu.memory_space<vmem>>, vector<36x288xf32>
    %cst = arith.constant dense<0.000000e+00> : vector<8x288xf32>
    %22 = tpu.matmul %20, %21, %cst {dimension_numbers = #tpu.dot_dimension_numbers<[1], [0], [0], [1], [0, 0, 1, 1], [], []>} : vector<8x36xf32>, vector<36x288xf32>, vector<8x288xf32> -> vector<8x288xf32>
    %c0_17 = arith.constant 0 : index
    %c0_18 = arith.constant 0 : index
    %23 = vector.load %arg4[%c0_17, %c0_18] : memref<8x1xf32, #tpu.memory_space<vmem>>, vector<8x1xf32>
    %24 = vector.broadcast %23 : vector<8x1xf32> to vector<8x288xf32>
    %25 = arith.addf %22, %24 : vector<8x288xf32>
    %cst_19 = arith.constant 0.000000e+00 : f32
    %26 = vector.broadcast %cst_19 : f32 to vector<8x288xf32>
    %27 = arith.maximumf %25, %26 : vector<8x288xf32>
    %c0_20 = arith.constant 0 : index
    %c0_21 = arith.constant 0 : index
    %c0_22 = arith.constant 0 : index
    %28 = vector.load %arg5[%c0_20, %c0_21, %c0_22] : memref<1x8x288xf32, #tpu.memory_space<vmem>>, vector<1x8x288xf32>
    %29 = vector.shape_cast %28 : vector<1x8x288xf32> to vector<8x288xf32>
    %30 = vector.shape_cast %27 : vector<8x288xf32> to vector<1x8x288xf32>
    tpu.vector_store %arg5[%c0_20, %c0_21, %c0_22], %30 {strides = array<i32>} : memref<1x8x288xf32, #tpu.memory_space<vmem>>, vector<1x8x288xf32>,
    return
  }
  func.func @transform_0(%arg0: i32, %arg1: i32) -> (i32, i32, i32, i32) {
    %c0_i32 = arith.constant 0 : i32
    %c0_i32_0 = arith.constant 0 : i32
    %c0_i32_1 = arith.constant 0 : i32
    return %arg0, %arg1, %c0_i32, %c0_i32_0 : i32, i32, i32, i32
  }
  func.func @transform_1(%arg0: i32, %arg1: i32) -> (i32, i32) {
    %c0_i32 = arith.constant 0 : i32
    %c0_i32_0 = arith.constant 0 : i32
    %c0_i32_1 = arith.constant 0 : i32
    return %c0_i32, %c0_i32_0 : i32, i32
  }
  func.func @transform_2(%arg0: i32, %arg1: i32) -> (i32, i32) {
    %c0_i32 = arith.constant 0 : i32
    %c0_i32_0 = arith.constant 0 : i32
    %c0_i32_1 = arith.constant 0 : i32
    return %c0_i32, %c0_i32_0 : i32, i32
  }
  func.func @transform_3(%arg0: i32, %arg1: i32) -> (i32, i32, i32) {
    %c0_i32 = arith.constant 0 : i32
    %c0_i32_0 = arith.constant 0 : i32
    return %arg0, %c0_i32, %arg1 : i32, i32, i32
  }
}

</mosaic_0001>

<bundles_post_ra>
// kernel: conv_bn_relu.1
= control target key start
LH: loop header
LB: loop body
LE: loop exit
PB: predicated region body
PF: predicated region fallthrough
CT: control target
= control target key end

     0   :  { %s695_s12 = smov 0   ;;  %s697_s13 = smov 0   ;;  %s787_s0 = inlined_call_operand.vmem [shape: f32[2,1,4,342], index: 0, kind: input, shape index: {}]   ;;  %s788_s1 = inlined_call_operand.vmem [shape: f32[8,36], index: 1, kind: input, shape index: {}]   ;;  %s789_s2 = inlined_call_operand.vmem [shape: f32[8,1], index: 2, kind: input, shape index: {}]   ;;  %s790_s3 = inlined_call_operand.vmem [shape: f32[2,8,288], index: 3, kind: output, shape index: {}]  }
   0x1   :  { %s699_s14 = smov 0  }
   0x2 LB: > { %s25_s15 = sadd.s32 1, %s660_s13  ;;  %p595_p0 = scmp.ge.s32.totalorder %s664_s14, 1  ;;  %s664_s14 = sphi %s699_s14, %s13_s14   ;;  %s660_s13 = sphi %s697_s13, %s792_s13   ;;  %s656_s12 = sphi %s695_s12, %s791_s12  }
   0x3   : > { %p27_p1 = scmp.ge.s32.totalorder %s25_s15, 2  ;;  %p157_p2 = scmp.lt.s32.totalorder %s664_s14, 3 }
   0x5   : > { %s794_s15 = smov (%p27_p1, %s25_s15), 0  ;;  %p158_p3 = pnand %p595_p0, %p157_p2 }
   0x6   : > { %p189_p4 = scmp.lt.s32.totalorder (!%p158_p3), %s656_s12, 1  ;;  %s666_s20 = smov (!%p158_p3), 127  }
   0x7   : > { %161 = sbr.rel (%p158_p3) target bundleno = 372 (0x174), region = 32  ;;  %s667_s21 = smov (!%p158_p3), 126  }
   0x8   : > { %s668_s22 = smov (!%p158_p3), 110   ;;  %s669_s23 = smov (!%p158_p3), 109  }
   0x9   : > { %s670_s24 = smov (!%p158_p3), 108   ;;  %s671_s25 = smov (!%p158_p3), 92  }
   0xa   : > { %s672_s26 = smov (!%p158_p3), 91   ;;  %s673_s27 = smov (!%p158_p3), 90  }
   0xc   : > { %s796_s12 = smov (!%p189_p4, %s656_s12), 1  ;;  %vm223_vm0 = vcmask 257024   ;;  %vm246_vm1 = vcmask 261124   ;;  %vm325_vm2 = vcmask 883712   ;;  %vm303_vm3 = vcmask 891904   ;;  %v414_v60 = vld [vmem:[%s789_s2] sm:$0xff] }
   0xd   : > { %s606_s16 = smul.u32 12, %s796_s12  ;;  %vm346_vm4 = vcmask 752640   ;;  %vm238_vm5 = vcmask 1039360   ;;  %vm368_vm6 = vcmask 744448   ;;  %vm260_vm7 = vcmask 1031168  }
   0xe   : > { %v674_v61 = vmov 0   ;;  %vm389_vm8 = vcmask 736256   ;;  %vm424_vm9 = vcmask 1043456   ;;  %vm282_vm10 = vcmask 900096   ;;  %s607_s5 = smul.u32 24, %s796_s12 }
   0xf   : > { %s197_s19 = scalar_lea.vmem %s787_s0, %s606_s16  ;;  %641 = vset.pattern.permute.xlu0 %v674_v61  ;;  %vm420_vm11 = vcmask 293888   ;;  %vm499_vm12 = vcmask 261120  }
  0x10   : > { %v209_v0 = vld [vmem:[%s197_s19 + $0x8] sm:$0xf]  ;;  %v719_v1 = vld [vmem:[%s197_s19] sm:$0xff]  ;;  %s206_s8 = scalar_lea.vmem %s790_s3, %s607_s5 }
  0x11   : > { %214 = vst [vmem:[#allocation1 + $0x10] ss:$2 sm:$0xff] %v209_v0 }
  0x12   : > { %212 = vst [vmem:[#allocation1] ss:$2 sm:$0xff] %v719_v1 }
  0x18   : > { %v722_v2 = vld.sshfl [vmem:[#allocation1 + $0x10] sm:$0xff pattern:$0x75316420] }
  0x19   : > { %228 = vst [vmem:[#allocation1 + $0x11] ss:$2 sm:$0xff] %v209_v0  ;;  %v215_v3 = vld.sshfl [vmem:[#allocation1] sm:$0xff pattern:$0x75316420] }
  0x1a   : > { %v216_v4 = vld.sshfl [vmem:[#allocation1 + $0x8] sm:$0xff pattern:$0x75316420]  ;;  %221 = vst [vmem:[#allocation2] sm:$0xf] %v215_v3 }
  0x1b   : > { %226 = vst [vmem:[#allocation1 + $0x1] ss:$2 sm:$0xff] %v719_v1 }
  0x1c   : > { %222 = vst [vmem:[#allocation2 + $0x8] sm:$0xf] %v216_v4 }
  0x1d   : > { %224 = vst.msk [vmem:[#allocation2 + $0x10] sm:$0xf] %vm223_vm0, %v722_v2 }
  0x20   : > { %v231_v5 = vld.sshfl [vmem:[#allocation1 + $0x10] sm:$0xff pattern:$0x75316420] }
  0x21   : > { %236 = vrot.lane.b32.xlu1 %v231_v5, %s666_s20  ;;  %250 = vst [vmem:[#allocation1 + $0x10] ss:$2 sm:$0xff] %v209_v0 }
  0x22   : > { %v229_v6 = vld.sshfl [vmem:[#allocation1] sm:$0xff pattern:$0x75316420]  ;;  %v230_v7 = vld.sshfl [vmem:[#allocation1 + $0x8] sm:$0xff pattern:$0x75316420] }
  0x23   : > { %248 = vst [vmem:[#allocation1] ss:$2 sm:$0xff] %v719_v1 }
  0x28   : > { %v253_v8 = vld.sshfl [vmem:[#allocation1 + $0x10] sm:$0xff pattern:$0x75316420] }
  0x29   : > { %258 = vrot.lane.b32.xlu1 %v253_v8, %s667_s21  ;;  %272 = vst [vmem:[#allocation1 + $0x11] ss:$2 sm:$0xff] %v209_v0  ;;  %v398_v8 = vld [vmem:[%s788_s1] sm:$0xff] }
  0x2a   : > { %v251_v9 = vld.sshfl [vmem:[#allocation1] sm:$0xff pattern:$0x75316420]  ;;  %v252_v10 = vld.sshfl [vmem:[#allocation1 + $0x8] sm:$0xff pattern:$0x75316420] }
  0x2b   : > { %254 = vrot.lane.b32.xlu0 %v251_v9, %s667_s21  ;;  %270 = vst [vmem:[#allocation1 + $0x1] ss:$2 sm:$0xff] %v719_v1 }
  0x30   : > { %v275_v11 = vld.sshfl [vmem:[#allocation1 + $0x10] sm:$0xff pattern:$0x75316420] }
  0x31   : > { %280 = vrot.lane.b32.xlu2 %v275_v11, %s668_s22  ;;  %293 = vst [vmem:[#allocation1 + $0x10] ss:$2 sm:$0xff] %v209_v0 }
  0x32   : > { %v273_v12 = vld.sshfl [vmem:[#allocation1] sm:$0xff pattern:$0x75316420]  ;;  %v274_v13 = vld.sshfl [vmem:[#allocation1 + $0x8] sm:$0xff pattern:$0x75316420] }
  0x33   : > { %291 = vst [vmem:[#allocation1] ss:$2 sm:$0xff] %v719_v1 }
  0x38   : > { %v296_v14 = vld.sshfl [vmem:[#allocation1 + $0x10] sm:$0xff pattern:$0x75316420] }
  0x39   : > { %301 = vrot.lane.b32.xlu1 %v296_v14, %s669_s23  ;;  %315 = vst [vmem:[#allocation1 + $0x11] ss:$2 sm:$0xff] %v209_v0 }
  0x3a   : > { %v294_v15 = vld.sshfl [vmem:[#allocation1] sm:$0xff pattern:$0x75316420]  ;;  %v295_v16 = vld.sshfl [vmem:[#allocation1 + $0x8] sm:$0xff pattern:$0x75316420] }
  0x3b   : > { %297 = vrot.lane.b32.xlu2 %v294_v15, %s669_s23  ;;  %299 = vrot.lane.b32.xlu0 %v295_v16, %s669_s23  ;;  %313 = vst [vmem:[#allocation1 + $0x1] ss:$2 sm:$0xff] %v719_v1 }
  0x40   : > { %v318_v17 = vld.sshfl [vmem:[#allocation1 + $0x10] sm:$0xff pattern:$0x75316420] }
  0x41   : > { %336 = vst [vmem:[#allocation1 + $0x10] ss:$2 sm:$0xff] %v209_v0 }
  0x42   : > { %v316_v18 = vld.sshfl [vmem:[#allocation1] sm:$0xff pattern:$0x75316420]  ;;  %v317_v19 = vld.sshfl [vmem:[#allocation1 + $0x8] sm:$0xff pattern:$0x75316420] }
  0x43   : > { %323 = vrot.lane.b32.xlu2 %v318_v17, %s670_s24  ;;  %319 = vrot.lane.b32.xlu1 %v316_v18, %s670_s24  ;;  %334 = vst [vmem:[#allocation1] ss:$2 sm:$0xff] %v719_v1 }
  0x48   : > { %v339_v20 = vld.sshfl [vmem:[#allocation1 + $0x10] sm:$0xff pattern:$0x75316420] }
  0x49   : > { %358 = vst [vmem:[#allocation1 + $0x11] ss:$2 sm:$0xff] %v209_v0  ;;  %344 = vrot.lane.b32.xlu0 %v339_v20, %s671_s25 }
  0x4a   : > { %v338_v21 = vld.sshfl [vmem:[#allocation1 + $0x8] sm:$0xff pattern:$0x75316420]  ;;  %v337_v22 = vld.sshfl [vmem:[#allocation1] sm:$0xff pattern:$0x75316420] }
  0x4b   : > { %321 = vrot.lane.b32.xlu2 %v317_v19, %s670_s24  ;;  %342 = vrot.lane.b32.xlu1 %v338_v21, %s671_s25  ;;  %356 = vst [vmem:[#allocation1 + $0x1] ss:$2 sm:$0xff] %v719_v1 }
  0x50   : > { %v361_v23 = vld.sshfl [vmem:[#allocation1 + $0x10] sm:$0xff pattern:$0x75316420] }
  0x51   : > { %379 = vst [vmem:[#allocation1 + $0x10] ss:$2 sm:$0xff] %v209_v0  ;;  %340 = vrot.lane.b32.xlu0 %v337_v22, %s671_s25 }
  0x52   : > { %v360_v24 = vld.sshfl [vmem:[#allocation1 + $0x8] sm:$0xff pattern:$0x75316420]  ;;  %v359_v25 = vld.sshfl [vmem:[#allocation1] sm:$0xff pattern:$0x75316420] }
  0x53   : > { %276 = vrot.lane.b32.xlu2 %v273_v12, %s668_s22  ;;  %366 = vrot.lane.b32.xlu1 %v361_v23, %s672_s26  ;;  %377 = vst [vmem:[#allocation1] ss:$2 sm:$0xff] %v719_v1 }
  0x58   : > { %v382_v26 = vld.sshfl [vmem:[#allocation1 + $0x10] sm:$0xff pattern:$0x75316420] }
  0x59   : > { %364 = vrot.lane.b32.xlu0 %v360_v24, %s672_s26 }
  0x5a   : > { %v380_v27 = vld.sshfl [vmem:[#allocation1] sm:$0xff pattern:$0x75316420]  ;;  %v381_v28 = vld.sshfl [vmem:[#allocation1 + $0x8] sm:$0xff pattern:$0x75316420] }
  0x5b   : > { %256 = vrot.lane.b32.xlu1 %v252_v10, %s667_s21  ;;  %362 = vrot.lane.b32.xlu2 %v359_v25, %s672_s26 }
  0x61   : > { %387 = vrot.lane.b32.xlu0 %v382_v26, %s673_s27 }
  0x63   : > { %383 = vrot.lane.b32.xlu2 %v380_v27, %s673_s27  ;;  %232 = vrot.lane.b32.xlu1 %v229_v6, %s666_s20 }
  0x69   : > { %385 = vrot.lane.b32.xlu0 %v381_v28, %s673_s27 }
  0x6b   : > { %234 = vrot.lane.b32.xlu2 %v230_v7, %s666_s20 }
  0x71   : > { %278 = vrot.lane.b32.xlu0 %v274_v13, %s668_s22 }
  0x79   : > { %417 = vperm.xlu0 %641, %v414_v60  }
  0x8b   : > { %v743_v29 = vpop.permute.xlu2 %280 }
  0x8c   : > { %290 = vst.msk [vmem:[#allocation2 + $0x28] sm:$0xf0] %vm246_vm1, %v743_v29 }
  0x93   : > { %v237_v30 = vpop.permute.xlu1 %236 }
  0x94   : > { %247 = vst.msk [vmem:[#allocation2 + $0x10] sm:$0xf0] %vm246_vm1, %v237_v30 }
  0x95   : > { %v298_v31 = vpop.permute.xlu2 %297 }
  0x9b   : > { %v259_v32 = vpop.permute.xlu1 %258  ;;  %v401_v10 = vld [vmem:[#allocation2 + $0x10] sm:$0xff] }
  0x9c   : > { %268 = vst.msk [vmem:[#allocation2 + $0x28] sm:$0xf] %vm223_vm0, %v259_v32 }
  0x9d   : > { %v324_v33 = vpop.permute.xlu2 %323  ;;  %v255_v34 = vpop.permute.xlu0 %254 }
  0x9e   : > { %333 = vst.msk [vmem:[#allocation2 + $0x40] sm:$0xf0] %vm246_vm1, %v324_v33 }
  0xa3   : > { %v404_v7 = vld [vmem:[#allocation2 + $0x28] sm:$0xff] }
  0xa5   : > { %v322_v35 = vpop.permute.xlu2 %321 }
  0xa6   : > { %v327_v36 = vsel %vm325_vm2, %v322_v35, %v324_v33 }
  0xa7   : > { %332 = vst [vmem:[#allocation2 + $0x38] sm:$0xf0] %v327_v36 }
  0xab   : > { %v302_v37 = vpop.permute.xlu1 %301 }
  0xac   : > { %311 = vst.msk [vmem:[#allocation2 + $0x40] sm:$0xf] %vm223_vm0, %v302_v37 }
  0xad   : > { %v752_v38 = vpop.permute.xlu2 %276  ;;  %v300_v39 = vpop.permute.xlu0 %299 }
  0xae   : > { %v304_v40 = vsel %vm303_vm3, %v298_v31, %v300_v39  ;;  %v305_v41 = vsel %vm303_vm3, %v300_v39, %v302_v37 }
  0xaf   : > { %309 = vst [vmem:[#allocation2 + $0x30] sm:$0xf] %v304_v40 }
  0xb0   : > { %310 = vst [vmem:[#allocation2 + $0x38] sm:$0xf] %v305_v41 }
  0xb3   : > { %v407_v6 = vld [vmem:[#allocation2 + $0x40] sm:$0xff] }
  0xb5   : > { %v320_v42 = vpop.permute.xlu1 %319  ;;  %v363_v43 = vpop.permute.xlu2 %362 }
  0xb6   : > { %v326_v44 = vsel %vm325_vm2, %v320_v42, %v322_v35 }
  0xb7   : > { %331 = vst [vmem:[#allocation2 + $0x30] sm:$0xf0] %v326_v44  ;;  %v406_v18 = vld [vmem:[#allocation2 + $0x38] sm:$0xff] }
  0xbb   : > { %v345_v45 = vpop.permute.xlu0 %344 }
  0xbc   : > { %354 = vst.msk [vmem:[#allocation2 + $0x58] sm:$0xf] %vm223_vm0, %v345_v45 }
  0xbd   : > { %v343_v46 = vpop.permute.xlu1 %342  ;;  %v384_v47 = vpop.permute.xlu2 %383 }
  0xbe   : > { %v348_v48 = vsel %vm346_vm4, %v343_v46, %v345_v45  ;;  %v405_v17 = vld [vmem:[#allocation2 + $0x30] sm:$0xff] }
  0xbf   : > { %353 = vst [vmem:[#allocation2 + $0x50] sm:$0xf] %v348_v48 }
  0xc3   : > { %v341_v49 = vpop.permute.xlu0 %340 }
  0xc4   : > { %v347_v50 = vsel %vm346_vm4, %v341_v49, %v343_v46 }
  0xc5   : > { %v367_v51 = vpop.permute.xlu1 %366  ;;  %352 = vst [vmem:[#allocation2 + $0x48] sm:$0xf] %v347_v50  ;;  %v235_v52 = vpop.permute.xlu2 %234 }
  0xc6   : > { %376 = vst.msk [vmem:[#allocation2 + $0x58] sm:$0xf0] %vm246_vm1, %v367_v51  ;;  %v240_v53 = vsel %vm238_vm5, %v235_v52, %v237_v30 }
  0xc7   : > { %245 = vst [vmem:[#allocation2 + $0x8] sm:$0xf0] %v240_v53 }
  0xcb   : > { %v365_v54 = vpop.permute.xlu0 %364 }
  0xcc   : > { %v369_v55 = vsel %vm368_vm6, %v363_v43, %v365_v54  ;;  %v370_v56 = vsel %vm368_vm6, %v365_v54, %v367_v51 }
  0xcd   : > { %v257_v57 = vpop.permute.xlu1 %256  ;;  %374 = vst [vmem:[#allocation2 + $0x48] sm:$0xf0] %v369_v55  ;;  %v410_v5 = vld [vmem:[#allocation2 + $0x58] sm:$0xff] }
  0xce   : > { %v261_v58 = vsel %vm260_vm7, %v255_v34, %v257_v57  ;;  %v262_v59 = vsel %vm260_vm7, %v257_v57, %v259_v32  ;;  %375 = vst [vmem:[#allocation2 + $0x50] sm:$0xf0] %v370_v56  ;;  %v400_v22 = vld [vmem:[#allocation2 + $0x8] sm:$0xff] }
  0xcf   : > { %266 = vst [vmem:[#allocation2 + $0x18] sm:$0xf] %v261_v58 }
  0xd0   : > { %267 = vst [vmem:[#allocation2 + $0x20] sm:$0xf] %v262_v59 }
  0xd3   : > { %v388_v62 = vpop.permute.xlu0 %387 }
  0xd4   : > { %397 = vst.msk [vmem:[#allocation2 + $0x70] sm:$0xf] %vm223_vm0, %v388_v62  ;;  %v408_v15 = vld [vmem:[#allocation2 + $0x48] sm:$0xff] }
  0xd5   : > { %v233_v63 = vpop.permute.xlu1 %232  ;;  %v409_v16 = vld [vmem:[#allocation2 + $0x50] sm:$0xff] }
  0xd6   : > { %v239_v0 = vsel %vm238_vm5, %v233_v63, %v235_v52 }
  0xd7   : > { %244 = vst [vmem:[#allocation2] sm:$0xf0] %v239_v0 }
  0xdb   : > { %v386_v1 = vpop.permute.xlu0 %385  ;;  %v413_v2 = vld [vmem:[#allocation2 + $0x70] sm:$0xf] }
  0xdc   : > { %v390_v3 = vsel %vm389_vm8, %v384_v47, %v386_v1  ;;  %v391_v4 = vsel %vm389_vm8, %v386_v1, %v388_v62  ;;  %602 = vmatpush.msk.msra.mxu2 %vm424_vm9, %v413_v2 }
  0xdd   : > { %395 = vst [vmem:[#allocation2 + $0x60] sm:$0xf] %v390_v3 }
  0xde   : > { %396 = vst [vmem:[#allocation2 + $0x68] sm:$0xf] %v391_v4  ;;  %486 = vmatpush.msra.mxu2 %v410_v5  ;;  %v399_v20 = vld [vmem:[#allocation2] sm:$0xff] }
  0xe0   : > { %487 = vmatpush.msra.mxu2 %v407_v6 }
  0xe2   : > { %488 = vmatpush.msra.mxu2 %v404_v7 }
  0xe3   : > { %v279_v9 = vpop.permute.xlu0 %278 }
  0xe4   : > { %v283_v11 = vsel %vm282_vm10, %v752_v38, %v279_v9  ;;  %v284_v12 = vsel %vm282_vm10, %v279_v9, %v743_v29  ;;  %489 = vmatpush.msra.mxu2 %v401_v10  ;;  %v411_v13 = vld [vmem:[#allocation2 + $0x60] sm:$0xf] }
  0xe5   : > { %288 = vst [vmem:[#allocation2 + $0x18] sm:$0xf0] %v283_v11  ;;  %598 = vmatpush.msk.msra.mxu0 %vm424_vm9, %v411_v13  ;;  %v412_v14 = vld [vmem:[#allocation2 + $0x68] sm:$0xf]  ;;  %603 = vmatmul.msk.f32.vlgmr.msra.gmra.mxu2 %vm420_vm11, %v398_v8 }
  0xe6   : > { %289 = vst [vmem:[#allocation2 + $0x20] sm:$0xf0] %v284_v12  ;;  %600 = vmatpush.msk.msra.mxu1 %vm424_vm9, %v412_v14 }
  0xe7   : > { %446 = vmatpush.msra.mxu0 %v408_v15 }
  0xe8   : > { %466 = vmatpush.msra.mxu1 %v409_v16 }
  0xe9   : > { %447 = vmatpush.msra.mxu0 %v405_v17 }
  0xea   : > { %467 = vmatpush.msra.mxu1 %v406_v18 }
  0xeb   : > { %v418_v23 = vpop.permute.xlu0 %417 }
  0xec   : > { %v402_v19 = vld [vmem:[#allocation2 + $0x18] sm:$0xff] }
  0xed   : > { %448 = vmatpush.msra.mxu0 %v402_v19  ;;  %v403_v21 = vld [vmem:[#allocation2 + $0x20] sm:$0xff] }
  0xee   : > { %468 = vmatpush.msra.mxu1 %v403_v21 }
  0xef   : > { %449 = vmatpush.msra.mxu0 %v399_v20 }
  0xf0   : > { %469 = vmatpush.msra.mxu1 %v400_v22  ;;  %599 = vmatmul.msk.f32.vlgmr.msra.gmra.mxu0 %vm420_vm11, %v398_v8 }
  0xf1   : > { %601 = vmatmul.msk.f32.vlgmr.msra.gmra.mxu1 %vm420_vm11, %v398_v8 }
 0x168   : > { %v491_v24 = vpop.f32.mrf.mxu2 }
 0x169   : > { %v492_v25 = vadd.f32 %v491_v24, %v418_v23 }
 0x16b   : > { %v496_v26 = vmax.f32 %v492_v25, 0.0 }
 0x16d   : > { %v451_v27 = vpop.f32.mrf.mxu0  ;;  %500 = vst.msk [vmem:[%s206_s8 + $0x10] sm:$0xff] %vm499_vm12, %v496_v26 }
 0x16e   : > { %v452_v28 = vadd.f32 %v451_v27, %v418_v23  ;;  %v471_v29 = vpop.f32.mrf.mxu1 }
 0x16f   : > { %v472_v30 = vadd.f32 %v471_v29, %v418_v23 }
 0x170   : > { %v494_v31 = vmax.f32 %v452_v28, 0.0 }
 0x171   : > { %v495_v32 = vmax.f32 %v472_v30, 0.0 }
 0x172   : > { %497 = vst [vmem:[%s206_s8] sm:$0xff] %v494_v31 }
 0x173   : > { %498 = vst [vmem:[%s206_s8 + $0x8] sm:$0xff] %v495_v32 }
 0x174 PF: > { %s13_s14 = sadd.s32 1, %s664_s14   ;;  %s791_s12 = smov %s660_s13 }
 0x175   : > { %p10_p5 = scmp.ge.s32.totalorder %s13_s14, 4   ;;  %s792_s13 = smov %s794_s15 }
 0x177   :  { %12 = sbr.rel (!%p10_p5) target bundleno = 2 (0x2), region = 75 }

</bundles_post_ra>
